<compile_context>
chip_gen: v6e
topology: v6e:2x2x1
jax: 0.10.0
libtpu: 0.0.40
codegen_flags: <defaults>
</compile_context>

<pallas_src>
import jax
import jax.numpy as jnp
from jax import lax
from jax.experimental import pallas as pl
from jax.experimental.pallas import tpu as pltpu


LANE = 128


def mlp_head_kernel(x_ref, w1_ref, b1_ref, w2_ref, b2_ref, w3t_ref, b3_ref, o_ref):
    # fc1 / fc2 on the MXU with f32 accumulation; fc3 (2 outputs) on VPU + XLU.
    x = x_ref[...]
    h1 = jnp.dot(x, w1_ref[...], preferred_element_type=jnp.float32) + b1_ref[...]
    h1 = jnp.maximum(h1, 0.0).astype(w2_ref.dtype)                  # ReLU
    h2 = jnp.dot(h1, w2_ref[...], preferred_element_type=jnp.float32) + b2_ref[...]
    h2 = jnp.maximum(h2, 0.0)                                       # ReLU, stays f32

    # fc3: two logits as elementwise mul + lane reduction (padded lanes of h2
    # and w3t are exactly zero, so they do not contaminate the sums).
    w3t = w3t_ref[...]                                              # (2, O_p) f32
    l0 = jnp.sum(h2 * w3t[0:1, :], axis=-1, keepdims=True)          # (tm, 1)
    l1 = jnp.sum(h2 * w3t[1:2, :], axis=-1, keepdims=True)          # (tm, 1)
    col = lax.broadcasted_iota(jnp.int32, o_ref.shape, 1)           # (tm, 2)
    out = jnp.where(col == 0, l0, l1) + b3_ref[...]

    # Narrow (tm, 2) store: masked vst, but the HBM output stream is 2 lanes
    # wide instead of a 128-lane zero-padded slab.
    o_ref[...] = out.astype(o_ref.dtype)


def _round_up(x, m):
    return ((x + m - 1) // m) * m


def _xla_head(x, params, compute_dtype):
    """Plain-XLA path for tiny M (pallas_call fixed overhead dominates there)."""
    w1, b1, w2, b2, w3, b3 = params
    x = x.astype(compute_dtype)
    h = jnp.maximum(jnp.dot(x, w1.astype(compute_dtype),
                            preferred_element_type=jnp.float32) + b1, 0.0)
    h = jnp.maximum(jnp.dot(h.astype(compute_dtype), w2.astype(compute_dtype),
                            preferred_element_type=jnp.float32) + b2, 0.0)
    return jnp.dot(h, w3, preferred_element_type=jnp.float32) + b3


def code_note_head(code_output, params, *, tm=1024, compute_dtype=None,
                   use_pallas=None):
    """Apply fc1->relu->fc2->relu->fc3 to the (B, S, D) encoder output.

    compute_dtype=None uses code_output.dtype unchanged (no extra HBM pass to
    re-cast x); pass a bf16 encoder output to get the bf16 MXU path.
    """
    w1, b1, w2, b2, w3, b3 = params
    B, S, D = code_output.shape
    H = w1.shape[1]
    O = w2.shape[1]
    C = w3.shape[1]            # = 2
    M = B * S
    if compute_dtype is None:
        compute_dtype = code_output.dtype

    # Small-M fallback: a single tiny grid step cannot beat XLA fusion.
    if use_pallas is None:
        use_pallas = M >= 512
    if not use_pallas:
        return _xla_head(code_output, params, compute_dtype)

    # Feature dims padded to 128-lane multiples (lane-dense MXU operands).
    D_p = _round_up(D, LANE)
    H_p = _round_up(H, LANE)
    O_p = _round_up(O, LANE)

    # Row tiling: biggest tile <= tm (fewer, longer DMAs on mem-bound v6e/v7x),
    # but guarantee >= 2 grid steps whenever M allows so the "parallel" axis
    # keeps both v7x TensorCores busy.
    steps = -(-M // tm)                       # cdiv(M, tm)
    if M >= 2 * LANE:
        steps = max(steps, 2)
    tm_eff = _round_up(-(-M // steps), LANE)
    M_p = tm_eff * steps
    grid_m = steps

    # Reshape is free; dtype cast is a no-op for compute_dtype == x.dtype; the
    # pad is only emitted when needed and fuses with its producer under jit.
    x2d = code_output.reshape(M, D).astype(compute_dtype)
    if (M_p - M) or (D_p - D):
        x2d = jnp.pad(x2d, ((0, M_p - M), (0, D_p - D)))

    def pad2(a, r, c):
        return jnp.pad(a, ((0, r - a.shape[0]), (0, c - a.shape[1])))

    w1p = pad2(w1, D_p, H_p).astype(compute_dtype)
    w2p = pad2(w2, H_p, O_p).astype(compute_dtype)
    w3tp = pad2(w3.T, C, O_p).astype(jnp.float32)     # (2, O_p), stays f32 (VPU fc3)
    b1p = pad2(b1, 1, H_p).astype(jnp.float32)
    b2p = pad2(b2, 1, O_p).astype(jnp.float32)
    b3p = b3.astype(jnp.float32)                      # (1, 2)

    # Cost estimate on the *real* (unpadded) work.
    dsize = jnp.dtype(compute_dtype).itemsize
    flops = 2 * M * (D * H + H * O + O * C)
    bytes_accessed = (
        M * D * dsize                       # x read
        + (D * H + H * O) * dsize           # fc1/fc2 weights
        + (O * C + H + O + C) * 4           # fc3 weights + biases (f32)
        + M * C * 4                         # output write (2 lanes, not 128)
    )

    # Constant index_map => the Mosaic pipeline does not re-fetch these blocks
    # on later grid steps; no extra pinning needed.
    const = lambda shape: pl.BlockSpec(shape, lambda i: (0, 0))

    out2d = pl.pallas_call(
        mlp_head_kernel,
        out_shape=jax.ShapeDtypeStruct((M_p, C), jnp.float32),
        grid_spec=pl.GridSpec(
            grid=(grid_m,),
            in_specs=[
                pl.BlockSpec((tm_eff, D_p), lambda i: (i, 0)),   # x rows
                const((D_p, H_p)), const((1, H_p)),              # fc1
                const((H_p, O_p)), const((1, O_p)),              # fc2
                const((C, O_p)), const((1, C)),                  # fc3 (W^T, bias)
            ],
            out_specs=pl.BlockSpec((tm_eff, C), lambda i: (i, 0)),
        ),
        compiler_params=pltpu.CompilerParams(
            dimension_semantics=("parallel",)),
        cost_estimate=pl.CostEstimate(
            flops=flops, transcendentals=0, bytes_accessed=bytes_accessed),
    )(x2d, w1p, b1p, w2p, b2p, w3tp, b3p)

    # Drop row padding and restore (B, S, 2).
    return out2d[:M, :].reshape(B, S, C)


def init_params(key, input_size, hidden_size, output_size):
    """Deterministic synthetic weights (stored as (in, out), i.e. W.T of torch)."""
    k1, k2, k3, k4, k5, k6 = jax.random.split(key, 6)
    w1 = jax.random.normal(k1, (input_size, hidden_size), jnp.float32) * (input_size ** -0.5)
    b1 = jax.random.normal(k2, (1, hidden_size), jnp.float32) * 0.01
    w2 = jax.random.normal(k3, (hidden_size, output_size), jnp.float32) * (hidden_size ** -0.5)
    b2 = jax.random.normal(k4, (1, output_size), jnp.float32) * 0.01
    w3 = jax.random.normal(k5, (output_size, 2), jnp.float32) * (output_size ** -0.5)
    b3 = jax.random.normal(k6, (1, 2), jnp.float32) * 0.01
    return (w1, b1, w2, b2, w3, b3)


def reference_head(code_output, params):
    w1, b1, w2, b2, w3, b3 = params
    h = jnp.maximum(code_output @ w1 + b1, 0.0)
    h = jnp.maximum(h @ w2 + b2, 0.0)
    return h @ w3 + b3


if __name__ == "__main__":
    # Small shapes: batch=2, seq=8, input_size=128, hidden=64, output_size=32.
    B, S = 2, 8
    input_size, hidden_size, output_size = 128, 64, 32

    key = jax.random.PRNGKey(0)
    k_x, k_p = jax.random.split(key)

    # Simulated code_encoder(...).last_hidden_state
    # TODO(synk): pretrained code/text transformer encoders are external and
    # not re-implemented; their output is simulated deterministically here.
    code_output = jax.random.normal(k_x, (B, S, input_size), jnp.float32)
    params = init_params(k_p, input_size, hidden_size, output_size)

    ref = reference_head(code_output, params)

    # f32 path (faithful to the PyTorch module), Pallas kernel forced on.
    run_f32 = jax.jit(lambda x: code_note_head(x, params, use_pallas=True))
    out = jax.block_until_ready(run_f32(code_output))
    assert out.shape == (B, S, 2)
    assert jnp.allclose(out, ref, atol=1e-4, rtol=1e-4)

    # bf16 path: the encoder emits bf16 directly, so no wrapper-side recast of
    # x is needed.  bf16 inputs/weights + f32 accumulation => looser tolerance.
    code_output_bf16 = code_output.astype(jnp.bfloat16)
    run_bf16 = jax.jit(lambda x: code_note_head(x, params, use_pallas=True))
    out_bf16 = jax.block_until_ready(run_bf16(code_output_bf16))
    assert out_bf16.shape == (B, S, 2)
    assert jnp.allclose(out_bf16, ref, atol=1e-1, rtol=1e-1)

    # Auto path: at this tiny M (=16) the wrapper falls back to plain XLA.
    out_auto = jax.block_until_ready(code_note_head(code_output, params))
    assert out_auto.shape == (B, S, 2)
    assert jnp.allclose(out_auto, ref, atol=1e-4, rtol=1e-4)

    print("KERNEL_OK")
</pallas_src>

<mosaic_0001>
module attributes {stable_mosaic.version = 11 : i64} {
  func.func @mlp_head_kernel(%arg0: i32, %arg1: memref<128x128xf32, #tpu.memory_space<vmem>>, %arg2: memref<128x128xf32, #tpu.memory_space<vmem>>, %arg3: memref<1x128xf32, #tpu.memory_space<vmem>>, %arg4: memref<128x128xf32, #tpu.memory_space<vmem>>, %arg5: memref<1x128xf32, #tpu.memory_space<vmem>>, %arg6: memref<2x128xf32, #tpu.memory_space<vmem>>, %arg7: memref<1x2xf32, #tpu.memory_space<vmem>>, %arg8: memref<128x2xf32, #tpu.memory_space<vmem>>) attributes {dimension_semantics = [#tpu.dimension_semantics<parallel>], iteration_bounds = array<i64: 1>, scalar_prefetch = 0 : i64, scratch_operands = 0 : i64, tpu.core_type = #tpu.core_type<tc>, window_params = [{transform_indices = @transform_0, window_bounds = array<i64: 128, 128>}, {pipeline_mode = #tpu.pipeline_mode<synchronous>, transform_indices = @transform_1, window_bounds = array<i64: 128, 128>}, {pipeline_mode = #tpu.pipeline_mode<synchronous>, transform_indices = @transform_2, window_bounds = array<i64: 1, 128>}, {pipeline_mode = #tpu.pipeline_mode<synchronous>, transform_indices = @transform_3, window_bounds = array<i64: 128, 128>}, {pipeline_mode = #tpu.pipeline_mode<synchronous>, transform_indices = @transform_4, window_bounds = array<i64: 1, 128>}, {pipeline_mode = #tpu.pipeline_mode<synchronous>, transform_indices = @transform_5, window_bounds = array<i64: 2, 128>}, {pipeline_mode = #tpu.pipeline_mode<synchronous>, transform_indices = @transform_6, window_bounds = array<i64: 1, 2>}, {transform_indices = @transform_7, window_bounds = array<i64: 128, 2>}]} {
    %c0 = arith.constant 0 : index
    %c0_0 = arith.constant 0 : index
    %0 = vector.load %arg1[%c0, %c0_0] : memref<128x128xf32, #tpu.memory_space<vmem>>, vector<128x128xf32>
    %c0_1 = arith.constant 0 : index
    %c0_2 = arith.constant 0 : index
    %1 = vector.load %arg2[%c0_1, %c0_2] : memref<128x128xf32, #tpu.memory_space<vmem>>, vector<128x128xf32>
    %cst = arith.constant dense<0.000000e+00> : vector<128x128xf32>
    %2 = tpu.matmul %0, %1, %cst {dimension_numbers = #tpu.dot_dimension_numbers<[1], [0], [0], [1], [0, 0, 1, 1], [], []>} : vector<128x128xf32>, vector<128x128xf32>, vector<128x128xf32> -> vector<128x128xf32>
    %c0_3 = arith.constant 0 : index
    %c0_4 = arith.constant 0 : index
    %3 = vector.load %arg3[%c0_3, %c0_4] : memref<1x128xf32, #tpu.memory_space<vmem>>, vector<1x128xf32>
    %4 = vector.broadcast %3 : vector<1x128xf32> to vector<128x128xf32>
    %5 = arith.addf %2, %4 : vector<128x128xf32>
    %cst_5 = arith.constant 0.000000e+00 : f32
    %6 = vector.broadcast %cst_5 : f32 to vector<128x128xf32>
    %7 = arith.maximumf %5, %6 : vector<128x128xf32>
    %c0_6 = arith.constant 0 : index
    %c0_7 = arith.constant 0 : index
    %8 = vector.load %arg4[%c0_6, %c0_7] : memref<128x128xf32, #tpu.memory_space<vmem>>, vector<128x128xf32>
    %cst_8 = arith.constant dense<0.000000e+00> : vector<128x128xf32>
    %9 = tpu.matmul %7, %8, %cst_8 {dimension_numbers = #tpu.dot_dimension_numbers<[1], [0], [0], [1], [0, 0, 1, 1], [], []>} : vector<128x128xf32>, vector<128x128xf32>, vector<128x128xf32> -> vector<128x128xf32>
    %c0_9 = arith.constant 0 : index
    %c0_10 = arith.constant 0 : index
    %10 = vector.load %arg5[%c0_9, %c0_10] : memref<1x128xf32, #tpu.memory_space<vmem>>, vector<1x128xf32>
    %11 = vector.broadcast %10 : vector<1x128xf32> to vector<128x128xf32>
    %12 = arith.addf %9, %11 : vector<128x128xf32>
    %cst_11 = arith.constant 0.000000e+00 : f32
    %13 = vector.broadcast %cst_11 : f32 to vector<128x128xf32>
    %14 = arith.maximumf %12, %13 : vector<128x128xf32>
    %c0_12 = arith.constant 0 : index
    %c0_13 = arith.constant 0 : index
    %15 = vector.load %arg6[%c0_12, %c0_13] : memref<2x128xf32, #tpu.memory_space<vmem>>, vector<2x128xf32>
    %16 = vector.extract_strided_slice %15 {offsets = [0, 0], sizes = [1, 128], strides = [1, 1]} : vector<2x128xf32> to vector<1x128xf32>
    %17 = vector.broadcast %16 : vector<1x128xf32> to vector<128x128xf32>
    %18 = arith.mulf %14, %17 : vector<128x128xf32>
    %cst_14 = arith.constant dense<0.000000e+00> : vector<128xf32>
    %19 = vector.multi_reduction <add>, %18, %cst_14 [1] : vector<128x128xf32> to vector<128xf32>
    %20 = vector.shape_cast %19 : vector<128xf32> to vector<128x1xf32>
    %21 = vector.extract_strided_slice %15 {offsets = [1, 0], sizes = [1, 128], strides = [1, 1]} : vector<2x128xf32> to vector<1x128xf32>
    %22 = vector.broadcast %21 : vector<1x128xf32> to vector<128x128xf32>
    %23 = arith.mulf %14, %22 : vector<128x128xf32>
    %cst_15 = arith.constant dense<0.000000e+00> : vector<128xf32>
    %24 = vector.multi_reduction <add>, %23, %cst_15 [1] : vector<128x128xf32> to vector<128xf32>
    %25 = vector.shape_cast %24 : vector<128xf32> to vector<128x1xf32>
    %26 = tpu.iota {dimensions = array<i32: 1>} : vector<128x2xi32>
    %c0_i32 = arith.constant 0 : i32
    %27 = vector.broadcast %c0_i32 : i32 to vector<128x2xi32>
    %28 = arith.cmpi eq, %26, %27 : vector<128x2xi32>
    %29 = vector.shape_cast %20 : vector<128x1xf32> to vector<128x1xf32>
    %30 = vector.broadcast %29 : vector<128x1xf32> to vector<128x2xf32>
    %31 = vector.shape_cast %25 : vector<128x1xf32> to vector<128x1xf32>
    %32 = vector.broadcast %31 : vector<128x1xf32> to vector<128x2xf32>
    %33 = arith.select %28, %30, %32 : vector<128x2xi1>, vector<128x2xf32>
    %c0_16 = arith.constant 0 : index
    %c0_17 = arith.constant 0 : index
    %34 = vector.load %arg7[%c0_16, %c0_17] : memref<1x2xf32, #tpu.memory_space<vmem>>, vector<1x2xf32>
    %35 = vector.broadcast %34 : vector<1x2xf32> to vector<128x2xf32>
    %36 = arith.addf %33, %35 : vector<128x2xf32>
    %c0_18 = arith.constant 0 : index
    %c0_19 = arith.constant 0 : index
    %37 = vector.load %arg8[%c0_18, %c0_19] : memref<128x2xf32, #tpu.memory_space<vmem>>, vector<128x2xf32>
    tpu.vector_store %arg8[%c0_18, %c0_19], %36 {strides = array<i32>} : memref<128x2xf32, #tpu.memory_space<vmem>>, vector<128x2xf32>,
    return
  }
  func.func @transform_0(%arg0: i32) -> (i32, i32) {
    %c0_i32 = arith.constant 0 : i32
    %c0_i32_0 = arith.constant 0 : i32
    return %arg0, %c0_i32 : i32, i32
  }
  func.func @transform_1(%arg0: i32) -> (i32, i32) {
    %c0_i32 = arith.constant 0 : i32
    %c0_i32_0 = arith.constant 0 : i32
    %c0_i32_1 = arith.constant 0 : i32
    return %c0_i32, %c0_i32_0 : i32, i32
  }
  func.func @transform_2(%arg0: i32) -> (i32, i32) {
    %c0_i32 = arith.constant 0 : i32
    %c0_i32_0 = arith.constant 0 : i32
    %c0_i32_1 = arith.constant 0 : i32
    return %c0_i32, %c0_i32_0 : i32, i32
  }
  func.func @transform_3(%arg0: i32) -> (i32, i32) {
    %c0_i32 = arith.constant 0 : i32
    %c0_i32_0 = arith.constant 0 : i32
    %c0_i32_1 = arith.constant 0 : i32
    return %c0_i32, %c0_i32_0 : i32, i32
  }
  func.func @transform_4(%arg0: i32) -> (i32, i32) {
    %c0_i32 = arith.constant 0 : i32
    %c0_i32_0 = arith.constant 0 : i32
    %c0_i32_1 = arith.constant 0 : i32
    return %c0_i32, %c0_i32_0 : i32, i32
  }
  func.func @transform_5(%arg0: i32) -> (i32, i32) {
    %c0_i32 = arith.constant 0 : i32
    %c0_i32_0 = arith.constant 0 : i32
    %c0_i32_1 = arith.constant 0 : i32
    return %c0_i32, %c0_i32_0 : i32, i32
  }
  func.func @transform_6(%arg0: i32) -> (i32, i32) {
    %c0_i32 = arith.constant 0 : i32
    %c0_i32_0 = arith.constant 0 : i32
    %c0_i32_1 = arith.constant 0 : i32
    return %c0_i32, %c0_i32_0 : i32, i32
  }
  func.func @transform_7(%arg0: i32) -> (i32, i32) {
    %c0_i32 = arith.constant 0 : i32
    %c0_i32_0 = arith.constant 0 : i32
    return %arg0, %c0_i32 : i32, i32
  }
}

</mosaic_0001>

<bundles_post_ra>
// kernel: _lambda_.1
= control target key start
LH: loop header
LB: loop body
LE: loop exit
PB: predicated region body
PF: predicated region fallthrough
CT: control target
= control target key end

     0   :  { %12 = vsyncpa [#allocation3], 0  ;;  %s797_s24 = smov [#allocation2]   ;;  %s1124_s0 = inlined_call_operand.vmem [shape: f32[128,128], index: 0, kind: input, shape index: {}]   ;;  %s1125_s1 = inlined_call_operand.hbm [shape: f32[128,128], index: 1, kind: input, shape index: {}]   ;;  %s1126_s2 = inlined_call_operand.vmem [shape: f32[1,128], index: 2, kind: input, shape index: {}]   ;;  %s1127_s3 = inlined_call_operand.vmem [shape: f32[128,128], index: 3, kind: input, shape index: {}]   ;;  %s1128_s4 = inlined_call_operand.vmem [shape: f32[1,128], index: 4, kind: input, shape index: {}]   ;;  %s1129_s5 = inlined_call_operand.vmem [shape: f32[2,128], index: 5, kind: input, shape index: {}]   ;;  %s1130_s6 = inlined_call_operand.vmem [shape: f32[1,2], index: 6, kind: input, shape index: {}]   ;;  %s1131_s7 = inlined_call_operand.vmem [shape: f32[128,2], index: 7, kind: output, shape index: {}]  }
   0x1   :  { %s20_s25 = sshll.u32 %s797_s24, 4  ;;  %s21_s25 = int_to_ptr.vmem [resolvable:$true] %s20_s25 }
   0x2   :  { %s783_s26 = scalar_lea.vmem %s21_s25, 2048  ;;  %p788_p1 = scmp.lt.s32.totalorder %s21_s25, %s21_s25 }
   0x3   :  { %p784_p0 = scmp.ne.s32.totalorder %s21_s25, %s783_s26  ;;  %p789_p2 = scmp.lt.s32.totalorder %s783_s26, %s783_s26 }
   0x5   :  { %p790_p3 = por %p789_p2, %p788_p1 }
   0x7   :  { %p791_p4 = pnand %p790_p3, %p784_p0 }
   0x9   :  { %794 = shalt.err (!%p791_p4)
}
   0xa   :  { %s798_s27 = smov 128   ;;  %s799_s28 = smov 8  }
   0xb   :  { %26 = dma.hbm_to_vmem [thread:$0]  %s1125_s1, 2048, %s21_s25, [#allocation3], %s798_s27, %s798_s27, %s799_s28  }
   0xc   :  { %795 = dma.done.wait [#allocation3], 2048  }
   0xd   :  { %796 = vsyncadd [#allocation3], 4294965248  ;;  %v71_v0 = vld [vmem:[#allocation2 + $0x78] sm:$0xff]  ;;  %v70_v1 = vld [vmem:[#allocation2 + $0x70] sm:$0xff]  ;;  %vm571_vm1 = vcmask 15360  }
   0xe   :  { %660 = vmatprep.subr.mxu0 %v71_v0  ;;  %v69_v2 = vld [vmem:[#allocation2 + $0x68] sm:$0xff]  ;;  %v68_v3 = vld [vmem:[#allocation2 + $0x60] sm:$0xff]  ;;  %v67_v5 = vld [vmem:[#allocation2 + $0x58] sm:$0xff] }
   0xf   :  { %661 = vmatpush3.msra.mxu0 %v71_v0  ;;  %v40_v4 = vld [vmem:[%s1124_s0] sm:$0xff]  ;;  %v66_v6 = vld [vmem:[#allocation2 + $0x50] sm:$0xff]  ;;  %v65_v7 = vld [vmem:[#allocation2 + $0x48] sm:$0xff] }
  0x10   :  { %662 = vmatprep.subr.mxu0 %v70_v1  ;;  %692 = vmatprep.mubr.f32.mxu0 %v40_v4  ;;  %v255_v8 = vld [vmem:[%s1127_s3 + $0x78] sm:$0xff]  ;;  %v254_v9 = vld [vmem:[%s1127_s3 + $0x70] sm:$0xff]  ;;  %v64_v10 = vld [vmem:[#allocation2 + $0x40] sm:$0xff] }
  0x11   :  { %663 = vmatpush3.msra.mxu0 %v70_v1  ;;  %716 = vmatprep.subr.mxu1 %v255_v8  ;;  %v253_v11 = vld [vmem:[%s1127_s3 + $0x68] sm:$0xff]  ;;  %v63_v12 = vld [vmem:[#allocation2 + $0x38] sm:$0xff]  ;;  %v252_v13 = vld [vmem:[%s1127_s3 + $0x60] sm:$0xff] }
  0x12   :  { %664 = vmatprep.subr.mxu0 %v69_v2  ;;  %717 = vmatpush3.msra.mxu1 %v255_v8  ;;  %v62_v14 = vld [vmem:[#allocation2 + $0x30] sm:$0xff]  ;;  %v251_v15 = vld [vmem:[%s1127_s3 + $0x58] sm:$0xff]  ;;  %v61_v16 = vld [vmem:[#allocation2 + $0x28] sm:$0xff] }
  0x13   :  { %665 = vmatpush3.msra.mxu0 %v69_v2  ;;  %718 = vmatprep.subr.mxu1 %v254_v9  ;;  %v250_v17 = vld [vmem:[%s1127_s3 + $0x50] sm:$0xff]  ;;  %v60_v18 = vld [vmem:[#allocation2 + $0x20] sm:$0xff]  ;;  %v249_v19 = vld [vmem:[%s1127_s3 + $0x48] sm:$0xff] }
  0x14   :  { %666 = vmatprep.subr.mxu0 %v68_v3  ;;  %719 = vmatpush3.msra.mxu1 %v254_v9  ;;  %v59_v20 = vld [vmem:[#allocation2 + $0x18] sm:$0xff]  ;;  %v248_v21 = vld [vmem:[%s1127_s3 + $0x40] sm:$0xff]  ;;  %v58_v22 = vld [vmem:[#allocation2 + $0x10] sm:$0xff] }
  0x15   :  { %667 = vmatpush3.msra.mxu0 %v68_v3  ;;  %720 = vmatprep.subr.mxu1 %v253_v11  ;;  %v247_v23 = vld [vmem:[%s1127_s3 + $0x38] sm:$0xff]  ;;  %v57_v24 = vld [vmem:[#allocation2 + $0x8] sm:$0xff]  ;;  %v246_v25 = vld [vmem:[%s1127_s3 + $0x30] sm:$0xff] }
  0x16   :  { %668 = vmatprep.subr.mxu0 %v67_v5  ;;  %721 = vmatpush3.msra.mxu1 %v253_v11  ;;  %v56_v26 = vld [vmem:[#allocation2] sm:$0xff]  ;;  %v245_v27 = vld [vmem:[%s1127_s3 + $0x28] sm:$0xff]  ;;  %v42_v30 = vld [vmem:[%s1124_s0 + $0x10] sm:$0xff] }
  0x17   :  { %669 = vmatpush3.msra.mxu0 %v67_v5  ;;  %722 = vmatprep.subr.mxu1 %v252_v13  ;;  %v41_v28 = vld [vmem:[%s1124_s0 + $0x8] sm:$0xff]  ;;  %v244_v29 = vld [vmem:[%s1127_s3 + $0x20] sm:$0xff]  ;;  %v43_v31 = vld [vmem:[%s1124_s0 + $0x18] sm:$0xff] }
  0x18   :  { %670 = vmatprep.subr.mxu0 %v66_v6  ;;  %723 = vmatpush3.msra.mxu1 %v252_v13  ;;  %v44_v32 = vld [vmem:[%s1124_s0 + $0x20] sm:$0xff]  ;;  %v45_v33 = vld [vmem:[%s1124_s0 + $0x28] sm:$0xff]  ;;  %v46_v34 = vld [vmem:[%s1124_s0 + $0x30] sm:$0xff] }
  0x19   :  { %671 = vmatpush3.msra.mxu0 %v66_v6  ;;  %724 = vmatprep.subr.mxu1 %v251_v15  ;;  %v47_v35 = vld [vmem:[%s1124_s0 + $0x38] sm:$0xff]  ;;  %v48_v36 = vld [vmem:[%s1124_s0 + $0x40] sm:$0xff]  ;;  %v49_v37 = vld [vmem:[%s1124_s0 + $0x48] sm:$0xff] }
  0x1a   :  { %672 = vmatprep.subr.mxu0 %v65_v7  ;;  %725 = vmatpush3.msra.mxu1 %v251_v15  ;;  %v50_v38 = vld [vmem:[%s1124_s0 + $0x50] sm:$0xff]  ;;  %v51_v39 = vld [vmem:[%s1124_s0 + $0x58] sm:$0xff]  ;;  %v52_v40 = vld [vmem:[%s1124_s0 + $0x60] sm:$0xff] }
  0x1b   :  { %673 = vmatpush3.msra.mxu0 %v65_v7  ;;  %726 = vmatprep.subr.mxu1 %v250_v17  ;;  %v53_v41 = vld [vmem:[%s1124_s0 + $0x68] sm:$0xff]  ;;  %v54_v42 = vld [vmem:[%s1124_s0 + $0x70] sm:$0xff]  ;;  %v55_v43 = vld [vmem:[%s1124_s0 + $0x78] sm:$0xff] }
  0x1c   :  { %674 = vmatprep.subr.mxu0 %v64_v10  ;;  %727 = vmatpush3.msra.mxu1 %v250_v17  ;;  %v243_v44 = vld [vmem:[%s1127_s3 + $0x18] sm:$0xff]  ;;  %v242_v45 = vld [vmem:[%s1127_s3 + $0x10] sm:$0xff]  ;;  %v241_v46 = vld [vmem:[%s1127_s3 + $0x8] sm:$0xff] }
  0x1d   :  { %675 = vmatpush3.msra.mxu0 %v64_v10  ;;  %728 = vmatprep.subr.mxu1 %v249_v19  ;;  %v240_v47 = vld [vmem:[%s1127_s3] sm:$0xff] }
  0x1e   :  { %676 = vmatprep.subr.mxu0 %v63_v12  ;;  %729 = vmatpush3.msra.mxu1 %v249_v19  ;;  %v593_v48 = vld [vmem:[%s1126_s2] ss:$0 sm:$0xff] }
  0x1f   :  { %677 = vmatpush3.msra.mxu0 %v63_v12  ;;  %730 = vmatprep.subr.mxu1 %v248_v21 }
  0x20   :  { %678 = vmatprep.subr.mxu0 %v62_v14  ;;  %731 = vmatpush3.msra.mxu1 %v248_v21 }
  0x21   :  { %679 = vmatpush3.msra.mxu0 %v62_v14  ;;  %732 = vmatprep.subr.mxu1 %v247_v23 }
  0x22   :  { %680 = vmatprep.subr.mxu0 %v61_v16  ;;  %733 = vmatpush3.msra.mxu1 %v247_v23 }
  0x23   :  { %681 = vmatpush3.msra.mxu0 %v61_v16  ;;  %734 = vmatprep.subr.mxu1 %v246_v25 }
  0x24   :  { %682 = vmatprep.subr.mxu0 %v60_v18  ;;  %735 = vmatpush3.msra.mxu1 %v246_v25 }
  0x25   :  { %683 = vmatpush3.msra.mxu0 %v60_v18  ;;  %736 = vmatprep.subr.mxu1 %v245_v27 }
  0x26   :  { %684 = vmatprep.subr.mxu0 %v59_v20  ;;  %737 = vmatpush3.msra.mxu1 %v245_v27 }
  0x27   :  { %685 = vmatpush3.msra.mxu0 %v59_v20  ;;  %738 = vmatprep.subr.mxu1 %v244_v29 }
  0x28   :  { %686 = vmatprep.subr.mxu0 %v58_v22  ;;  %739 = vmatpush3.msra.mxu1 %v244_v29 }
  0x29   :  { %687 = vmatpush3.msra.mxu0 %v58_v22  ;;  %740 = vmatprep.subr.mxu1 %v243_v44 }
  0x2a   :  { %688 = vmatprep.subr.mxu0 %v57_v24  ;;  %741 = vmatpush3.msra.mxu1 %v243_v44 }
  0x2b   :  { %689 = vmatpush3.msra.mxu0 %v57_v24  ;;  %742 = vmatprep.subr.mxu1 %v242_v45 }
  0x2c   :  { %690 = vmatprep.subr.mxu0 %v56_v26  ;;  %743 = vmatpush3.msra.mxu1 %v242_v45 }
  0x2d   :  { %691 = vmatpush3.msra.mxu0 %v56_v26  ;;  %744 = vmatprep.subr.mxu1 %v241_v46 }
  0x2e   :  { %693 = vmatmul.mubr.f32.vlgmr.msra.gmra.mxu0 %v41_v28  ;;  %745 = vmatpush3.msra.mxu1 %v241_v46 }
  0x2f   :  { %695 = vmatprep.mubr.f32.mxu0 %v42_v30  ;;  %746 = vmatprep.subr.mxu1 %v240_v47 }
  0x30   :  { %747 = vmatpush3.msra.mxu1 %v240_v47 }
  0x32   :  { %696 = vmatmul.mubr.f32.gmra.mxu0 %v43_v31 }
  0x33   :  { %698 = vmatprep.mubr.f32.mxu0 %v44_v32 }
  0x36   :  { %699 = vmatmul.mubr.f32.gmra.mxu0 %v45_v33  ;;  %v425_v33 = vlaneseq }
  0x37   :  { %701 = vmatprep.mubr.f32.mxu0 %v46_v34 }
  0x38   :  { %v426_v34 = vshrl.u32 %v425_v33, 7 }
  0x3a   :  { %702 = vmatmul.mubr.f32.gmra.mxu0 %v47_v35  ;;  %v479_v35 = vsub.s32 1, %v426_v34 }
  0x3b   :  { %704 = vmatprep.mubr.f32.mxu0 %v48_v36  ;;  %v427_v36 = vsub.s32 0, %v426_v34 }
  0x3e   :  { %705 = vmatmul.mubr.f32.gmra.mxu0 %v49_v37  ;;  %v946_v37 = vld [vmem:[%s1128_s4] ss:$0 sm:$0xff] }
  0x3f   :  { %707 = vmatprep.mubr.f32.mxu0 %v50_v38  ;;  %v424_v38 = vld [vmem:[%s1129_s5] sm:$0x3] }
  0x42   :  { %708 = vmatmul.mubr.f32.gmra.mxu0 %v51_v39 }
  0x43   :  { %710 = vmatprep.mubr.f32.mxu0 %v52_v40 }
  0x46   :  { %711 = vmatmul.mubr.f32.gmra.mxu0 %v53_v41  ;;  %v952_v41 = vrot.slane %v424_v38, %v479_v35 }
  0x47   :  { %713 = vmatprep.mubr.f32.mxu0 %v54_v42  ;;  %v954_v42 = vrot.slane %v424_v38, %v427_v36 }
  0x4a   :  { %714 = vmatmul.mubr.f32.gmra.mxu0 %v55_v43 }
  0xee   :  { %v694_v49 = vpop.f32.mrf.mxu0 }
  0xef   :  { %v151_v50 = vadd.f32 %v694_v49, %v593_v48 }
  0xf0   :  { %v145_v51 = vpop.f32.mrf.mxu0 }
  0xf1   :  { %v146_v52 = vadd.f32 %v593_v48, %v145_v51  ;;  %v225_v55 = vmax.f32 %v151_v50, 0.0 }
  0xf2   :  { %v697_v53 = vpop.f32.mrf.mxu0 }
  0xf3   :  { %v224_v54 = vmax.f32 %v146_v52, 0.0  ;;  %v161_v56 = vadd.f32 %v697_v53, %v593_v48 }
  0xf4   :  { %v155_v57 = vpop.f32.mrf.mxu0 }
  0xf5   :  { %v156_v58 = vadd.f32 %v593_v48, %v155_v57  ;;  %748 = vmatprep.mubr.f32.mxu1 %v224_v54  ;;  %v227_v62 = vmax.f32 %v161_v56, 0.0 }
  0xf6   :  { %749 = vmatmul.mubr.f32.vlgmr.msra.gmra.mxu1 %v225_v55  ;;  %v700_v59 = vpop.f32.mrf.mxu0 }
  0xf7   :  { %v226_v60 = vmax.f32 %v156_v58, 0.0  ;;  %v171_v61 = vadd.f32 %v700_v59, %v593_v48 }
  0xf8   :  { %v165_v63 = vpop.f32.mrf.mxu0 }
  0xf9   :  { %v166_v0 = vadd.f32 %v593_v48, %v165_v63  ;;  %751 = vmatprep.mubr.f32.mxu1 %v226_v60  ;;  %v229_v1 = vmax.f32 %v171_v61, 0.0 }
  0xfa   :  { %752 = vmatmul.mubr.f32.gmra.mxu1 %v227_v62  ;;  %v703_v2 = vpop.f32.mrf.mxu0 }
  0xfb   :  { %v228_v3 = vmax.f32 %v166_v0, 0.0  ;;  %v181_v4 = vadd.f32 %v703_v2, %v593_v48 }
  0xfc   :  { %v175_v5 = vpop.f32.mrf.mxu0 }
  0xfd   :  { %754 = vmatprep.mubr.f32.mxu1 %v228_v3  ;;  %v176_v6 = vadd.f32 %v593_v48, %v175_v5  ;;  %v231_v7 = vmax.f32 %v181_v4, 0.0 }
  0xfe   :  { %755 = vmatmul.mubr.f32.gmra.mxu1 %v229_v1  ;;  %v706_v8 = vpop.f32.mrf.mxu0 }
  0xff   :  { %v230_v9 = vmax.f32 %v176_v6, 0.0  ;;  %v191_v10 = vadd.f32 %v706_v8, %v593_v48 }
 0x100   :  { %v185_v11 = vpop.f32.mrf.mxu0 }
 0x101   :  { %757 = vmatprep.mubr.f32.mxu1 %v230_v9  ;;  %v186_v12 = vadd.f32 %v593_v48, %v185_v11  ;;  %v233_v13 = vmax.f32 %v191_v10, 0.0 }
 0x102   :  { %758 = vmatmul.mubr.f32.gmra.mxu1 %v231_v7  ;;  %v709_v14 = vpop.f32.mrf.mxu0 }
 0x103   :  { %v232_v15 = vmax.f32 %v186_v12, 0.0  ;;  %v201_v16 = vadd.f32 %v709_v14, %v593_v48 }
 0x104   :  { %v195_v17 = vpop.f32.mrf.mxu0 }
 0x105   :  { %760 = vmatprep.mubr.f32.mxu1 %v232_v15  ;;  %v196_v18 = vadd.f32 %v593_v48, %v195_v17  ;;  %v235_v19 = vmax.f32 %v201_v16, 0.0 }
 0x106   :  { %761 = vmatmul.mubr.f32.gmra.mxu1 %v233_v13  ;;  %v712_v20 = vpop.f32.mrf.mxu0 }
 0x107   :  { %v234_v21 = vmax.f32 %v196_v18, 0.0  ;;  %v211_v22 = vadd.f32 %v712_v20, %v593_v48 }
 0x108   :  { %v205_v23 = vpop.f32.mrf.mxu0 }
 0x109   :  { %763 = vmatprep.mubr.f32.mxu1 %v234_v21  ;;  %v206_v24 = vadd.f32 %v593_v48, %v205_v23  ;;  %v237_v25 = vmax.f32 %v211_v22, 0.0 }
 0x10a   :  { %764 = vmatmul.mubr.f32.gmra.mxu1 %v235_v19  ;;  %v715_v26 = vpop.f32.mrf.mxu0 }
 0x10b   :  { %v236_v27 = vmax.f32 %v206_v24, 0.0  ;;  %v221_v28 = vadd.f32 %v715_v26, %v593_v48 }
 0x10c   :  { %v215_v29 = vpop.f32.mrf.mxu0 }
 0x10d   :  { %766 = vmatprep.mubr.f32.mxu1 %v236_v27  ;;  %v216_v30 = vadd.f32 %v593_v48, %v215_v29  ;;  %v239_v31 = vmax.f32 %v221_v28, 0.0 }
 0x10e   :  { %767 = vmatmul.mubr.f32.gmra.mxu1 %v237_v25 }
 0x10f   :  { %v238_v32 = vmax.f32 %v216_v30, 0.0 }
 0x111   :  { %769 = vmatprep.mubr.f32.mxu1 %v238_v32 }
 0x112   :  { %770 = vmatmul.mubr.f32.gmra.mxu1 %v239_v31 }
 0x1b6   :  { %v750_v39 = vpop.f32.mrf.mxu1 }
 0x1b7   :  { %v335_v40 = vadd.f32 %v750_v39, %v946_v37 }
 0x1b8   :  { %v329_v43 = vpop.f32.mrf.mxu1 }
 0x1b9   :  { %v409_v44 = vmax.f32 %v335_v40, 0.0  ;;  %v330_v45 = vadd.f32 %v946_v37, %v329_v43 }
 0x1ba   :  { %v753_v46 = vpop.f32.mrf.mxu1 }
 0x1bb   :  { %v408_v47 = vmax.f32 %v330_v45, 0.0  ;;  %v345_v48 = vadd.f32 %v753_v46, %v946_v37  ;;  %v482_v49 = vmul.f32 %v952_v41, %v409_v44  ;;  %v430_v50 = vmul.f32 %v954_v42, %v409_v44 }
 0x1bc   :  { %v339_v51 = vpop.f32.mrf.mxu1 }
 0x1bd   :  { %v411_v52 = vmax.f32 %v345_v48, 0.0  ;;  %499 = vadd.xlane.f32.xlu1 %v482_v49  ;;  %447 = vadd.xlane.f32.xlu0 %v430_v50  ;;  %v340_v54 = vadd.f32 %v946_v37, %v339_v51  ;;  %v429_v56 = vmul.f32 %v954_v42, %v408_v47  ;;  %v481_v58 = vmul.f32 %v952_v41, %v408_v47 }
 0x1be   :  { %v756_v53 = vpop.f32.mrf.mxu1 }
 0x1bf   :  { %v432_v55 = vmul.f32 %v954_v42, %v411_v52  ;;  %v410_v59 = vmax.f32 %v340_v54, 0.0  ;;  %v355_v60 = vadd.f32 %v756_v53, %v946_v37  ;;  %v484_v62 = vmul.f32 %v952_v41, %v411_v52 }
 0x1c0   :  { %v349_v57 = vpop.f32.mrf.mxu1 }
 0x1c1   :  { %451 = vadd.xlane.f32.xlu1 %v432_v55  ;;  %445 = vadd.xlane.f32.xlu0 %v429_v56  ;;  %v350_v61 = vadd.f32 %v946_v37, %v349_v57  ;;  %v413_v0 = vmax.f32 %v355_v60, 0.0  ;;  %v431_v2 = vmul.f32 %v954_v42, %v410_v59  ;;  %v483_v3 = vmul.f32 %v952_v41, %v410_v59 }
 0x1c2   :  { %v759_v63 = vpop.f32.mrf.mxu1  ;;  %v1004_v60 = vand.u32 127, %v425_v33 }
 0x1c3   :  { %v412_v1 = vmax.f32 %v350_v61, 0.0  ;;  %v365_v5 = vadd.f32 %v759_v63, %v946_v37  ;;  %v434_v7 = vmul.f32 %v954_v42, %v413_v0  ;;  %v486_v12 = vmul.f32 %v952_v41, %v413_v0  ;;  %v1010_v61 = vld [vmem:[%s1130_s6] ss:$0 sm:$0xff] }
 0x1c4   :  { %v359_v4 = vpop.f32.mrf.mxu1  ;;  %vm531_vm0 = vcmp.eq.s32.totalorder %v1004_v60, 0 }
 0x1c5   :  { %503 = vadd.xlane.f32.xlu1 %v484_v62  ;;  %497 = vadd.xlane.f32.xlu0 %v481_v58  ;;  %v360_v6 = vadd.f32 %v946_v37, %v359_v4  ;;  %v433_v8 = vmul.f32 %v954_v42, %v412_v1  ;;  %v415_v10 = vmax.f32 %v365_v5, 0.0  ;;  %v485_v13 = vmul.f32 %v952_v41, %v412_v1 }
 0x1c6   :  { %v762_v9 = vpop.f32.mrf.mxu1 }
 0x1c7   :  { %v414_v11 = vmax.f32 %v360_v6, 0.0  ;;  %v375_v15 = vadd.f32 %v762_v9, %v946_v37  ;;  %v436_v17 = vmul.f32 %v954_v42, %v415_v10  ;;  %v488_v22 = vmul.f32 %v952_v41, %v415_v10 }
 0x1c8   :  { %v369_v14 = vpop.f32.mrf.mxu1 }
 0x1c9   :  { %449 = vadd.xlane.f32.xlu1 %v431_v2  ;;  %501 = vadd.xlane.f32.xlu0 %v483_v3  ;;  %v370_v16 = vadd.f32 %v946_v37, %v369_v14  ;;  %v435_v18 = vmul.f32 %v954_v42, %v414_v11  ;;  %v417_v20 = vmax.f32 %v375_v15, 0.0  ;;  %v487_v23 = vmul.f32 %v952_v41, %v414_v11 }
 0x1ca   :  { %v765_v19 = vpop.f32.mrf.mxu1 }
 0x1cb   :  { %v416_v21 = vmax.f32 %v370_v16, 0.0  ;;  %v385_v25 = vadd.f32 %v765_v19, %v946_v37  ;;  %v438_v27 = vmul.f32 %v954_v42, %v417_v20  ;;  %v490_v32 = vmul.f32 %v952_v41, %v417_v20 }
 0x1cc   :  { %v379_v24 = vpop.f32.mrf.mxu1 }
 0x1cd   :  { %455 = vadd.xlane.f32.xlu1 %v434_v7  ;;  %453 = vadd.xlane.f32.xlu0 %v433_v8  ;;  %v380_v26 = vadd.f32 %v946_v37, %v379_v24  ;;  %v437_v28 = vmul.f32 %v954_v42, %v416_v21  ;;  %v419_v30 = vmax.f32 %v385_v25, 0.0  ;;  %v489_v34 = vmul.f32 %v952_v41, %v416_v21 }
 0x1ce   :  { %v768_v29 = vpop.f32.mrf.mxu1 }
 0x1cf   :  { %v418_v31 = vmax.f32 %v380_v26, 0.0  ;;  %v395_v36 = vadd.f32 %v768_v29, %v946_v37  ;;  %v440_v39 = vmul.f32 %v954_v42, %v419_v30  ;;  %v492_v46 = vmul.f32 %v952_v41, %v419_v30 }
 0x1d0   :  { %v389_v35 = vpop.f32.mrf.mxu1 }
 0x1d1   :  { %507 = vadd.xlane.f32.xlu1 %v486_v12  ;;  %505 = vadd.xlane.f32.xlu0 %v485_v13  ;;  %v390_v38 = vadd.f32 %v946_v37, %v389_v35  ;;  %v439_v40 = vmul.f32 %v954_v42, %v418_v31  ;;  %v421_v44 = vmax.f32 %v395_v36, 0.0  ;;  %v491_v47 = vmul.f32 %v952_v41, %v418_v31 }
 0x1d2   :  { %v771_v43 = vpop.f32.mrf.mxu1 }
 0x1d3   :  { %v420_v45 = vmax.f32 %v390_v38, 0.0  ;;  %v405_v49 = vadd.f32 %v771_v43, %v946_v37  ;;  %v442_v51 = vmul.f32 %v954_v42, %v421_v44  ;;  %v494_v55 = vmul.f32 %v952_v41, %v421_v44 }
 0x1d4   :  { %v399_v48 = vpop.f32.mrf.mxu1 }
 0x1d5   :  { %459 = vadd.xlane.f32.xlu1 %v436_v17  ;;  %457 = vadd.xlane.f32.xlu0 %v435_v18  ;;  %v400_v50 = vadd.f32 %v946_v37, %v399_v48  ;;  %v441_v52 = vmul.f32 %v954_v42, %v420_v45  ;;  %v423_v53 = vmax.f32 %v405_v49, 0.0  ;;  %v493_v56 = vmul.f32 %v952_v41, %v420_v45 }
 0x1d7   :  { %v422_v54 = vmax.f32 %v400_v50, 0.0  ;;  %v444_v57 = vmul.f32 %v954_v42, %v423_v53  ;;  %v496_v37 = vmul.f32 %v952_v41, %v423_v53 }
 0x1d9   :  { %511 = vadd.xlane.f32.xlu1 %v488_v22  ;;  %509 = vadd.xlane.f32.xlu0 %v487_v23  ;;  %v443_v58 = vmul.f32 %v954_v42, %v422_v54  ;;  %v495_v59 = vmul.f32 %v952_v41, %v422_v54 }
 0x1dd   :  { %463 = vadd.xlane.f32.xlu1 %v438_v27  ;;  %461 = vadd.xlane.f32.xlu0 %v437_v28 }
 0x1e1   :  { %515 = vadd.xlane.f32.xlu1 %v490_v32  ;;  %513 = vadd.xlane.f32.xlu0 %v489_v34 }
 0x1e5   :  { %467 = vadd.xlane.f32.xlu1 %v440_v39  ;;  %465 = vadd.xlane.f32.xlu0 %v439_v40 }
 0x1e9   :  { %519 = vadd.xlane.f32.xlu1 %v492_v46  ;;  %517 = vadd.xlane.f32.xlu0 %v491_v47 }
 0x1ed   :  { %471 = vadd.xlane.f32.xlu1 %v442_v51  ;;  %469 = vadd.xlane.f32.xlu0 %v441_v52 }
 0x1f1   :  { %523 = vadd.xlane.f32.xlu1 %v494_v55  ;;  %521 = vadd.xlane.f32.xlu0 %v493_v56 }
 0x1f5   :  { %475 = vadd.xlane.f32.xlu1 %v444_v57  ;;  %473 = vadd.xlane.f32.xlu0 %v443_v58 }
 0x1f9   :  { %527 = vadd.xlane.f32.xlu1 %v496_v37  ;;  %525 = vadd.xlane.f32.xlu0 %v495_v59 }
 0x246   :  { %v500_v62 = vpop.xlane.xlu1 %499  ;;  %v448_v42 = vpop.xlane.xlu0 %447 }
 0x247   :  { %v533_v63 = vsel %vm531_vm0, %v448_v42, %v500_v62 }
 0x248   :  { %v556_v41 = vadd.f32 %v1010_v61, %v533_v63 }
 0x24a   :  { %573 = vst.msk [vmem:[%s1131_s7 + $0x8] sm:$0xff] %vm571_vm1, %v556_v41  ;;  %v452_v33 = vpop.xlane.xlu1 %451  ;;  %v446_v0 = vpop.xlane.xlu0 %445 }
 0x24e   :  { %v504_v1 = vpop.xlane.xlu1 %503  ;;  %v498_v2 = vpop.xlane.xlu0 %497 }
 0x24f   :  { %v535_v3 = vsel %vm531_vm0, %v452_v33, %v504_v1  ;;  %v532_v4 = vsel %vm531_vm0, %v446_v0, %v498_v2 }
 0x250   :  { %v558_v5 = vadd.f32 %v1010_v61, %v535_v3  ;;  %v555_v6 = vadd.f32 %v1010_v61, %v532_v4 }
 0x252   :  { %575 = vst.msk [vmem:[%s1131_s7 + $0x18] sm:$0xff] %vm571_vm1, %v558_v5  ;;  %572 = vst.msk [vmem:[%s1131_s7] sm:$0xff] %vm571_vm1, %v555_v6  ;;  %v450_v7 = vpop.xlane.xlu1 %449  ;;  %v502_v8 = vpop.xlane.xlu0 %501 }
 0x253   :  { %v534_v9 = vsel %vm531_vm0, %v450_v7, %v502_v8 }
 0x254   :  { %v557_v10 = vadd.f32 %v1010_v61, %v534_v9 }
 0x256   :  { %574 = vst.msk [vmem:[%s1131_s7 + $0x10] sm:$0xff] %vm571_vm1, %v557_v10  ;;  %v456_v11 = vpop.xlane.xlu1 %455  ;;  %v454_v12 = vpop.xlane.xlu0 %453 }
 0x25a   :  { %v508_v13 = vpop.xlane.xlu1 %507  ;;  %v506_v14 = vpop.xlane.xlu0 %505 }
 0x25b   :  { %v537_v15 = vsel %vm531_vm0, %v456_v11, %v508_v13  ;;  %v536_v16 = vsel %vm531_vm0, %v454_v12, %v506_v14 }
 0x25c   :  { %v560_v17 = vadd.f32 %v1010_v61, %v537_v15  ;;  %v559_v18 = vadd.f32 %v1010_v61, %v536_v16 }
 0x25e   :  { %577 = vst.msk [vmem:[%s1131_s7 + $0x28] sm:$0xff] %vm571_vm1, %v560_v17  ;;  %576 = vst.msk [vmem:[%s1131_s7 + $0x20] sm:$0xff] %vm571_vm1, %v559_v18  ;;  %v460_v19 = vpop.xlane.xlu1 %459  ;;  %v458_v20 = vpop.xlane.xlu0 %457 }
 0x262   :  { %v512_v21 = vpop.xlane.xlu1 %511  ;;  %v510_v22 = vpop.xlane.xlu0 %509 }
 0x263   :  { %v539_v23 = vsel %vm531_vm0, %v460_v19, %v512_v21  ;;  %v538_v24 = vsel %vm531_vm0, %v458_v20, %v510_v22 }
 0x264   :  { %v562_v25 = vadd.f32 %v1010_v61, %v539_v23  ;;  %v561_v26 = vadd.f32 %v1010_v61, %v538_v24 }
 0x266   :  { %579 = vst.msk [vmem:[%s1131_s7 + $0x38] sm:$0xff] %vm571_vm1, %v562_v25  ;;  %578 = vst.msk [vmem:[%s1131_s7 + $0x30] sm:$0xff] %vm571_vm1, %v561_v26  ;;  %v464_v27 = vpop.xlane.xlu1 %463  ;;  %v462_v28 = vpop.xlane.xlu0 %461 }
 0x26a   :  { %v516_v29 = vpop.xlane.xlu1 %515  ;;  %v514_v30 = vpop.xlane.xlu0 %513 }
 0x26b   :  { %v541_v31 = vsel %vm531_vm0, %v464_v27, %v516_v29  ;;  %v540_v32 = vsel %vm531_vm0, %v462_v28, %v514_v30 }
 0x26c   :  { %v564_v34 = vadd.f32 %v1010_v61, %v541_v31  ;;  %v563_v35 = vadd.f32 %v1010_v61, %v540_v32 }
 0x26e   :  { %581 = vst.msk [vmem:[%s1131_s7 + $0x48] sm:$0xff] %vm571_vm1, %v564_v34  ;;  %580 = vst.msk [vmem:[%s1131_s7 + $0x40] sm:$0xff] %vm571_vm1, %v563_v35  ;;  %v468_v36 = vpop.xlane.xlu1 %467  ;;  %v466_v38 = vpop.xlane.xlu0 %465 }
 0x272   :  { %v520_v39 = vpop.xlane.xlu1 %519  ;;  %v518_v40 = vpop.xlane.xlu0 %517 }
 0x273   :  { %v543_v43 = vsel %vm531_vm0, %v468_v36, %v520_v39  ;;  %v542_v44 = vsel %vm531_vm0, %v466_v38, %v518_v40 }
 0x274   :  { %v566_v45 = vadd.f32 %v1010_v61, %v543_v43  ;;  %v565_v46 = vadd.f32 %v1010_v61, %v542_v44 }
 0x276   :  { %583 = vst.msk [vmem:[%s1131_s7 + $0x58] sm:$0xff] %vm571_vm1, %v566_v45  ;;  %582 = vst.msk [vmem:[%s1131_s7 + $0x50] sm:$0xff] %vm571_vm1, %v565_v46  ;;  %v472_v47 = vpop.xlane.xlu1 %471  ;;  %v470_v48 = vpop.xlane.xlu0 %469 }
 0x27a   :  { %v524_v49 = vpop.xlane.xlu1 %523  ;;  %v522_v50 = vpop.xlane.xlu0 %521 }
 0x27b   :  { %v545_v51 = vsel %vm531_vm0, %v472_v47, %v524_v49  ;;  %v544_v52 = vsel %vm531_vm0, %v470_v48, %v522_v50 }
 0x27c   :  { %v568_v53 = vadd.f32 %v1010_v61, %v545_v51  ;;  %v567_v54 = vadd.f32 %v1010_v61, %v544_v52 }
 0x27e   :  { %585 = vst.msk [vmem:[%s1131_s7 + $0x68] sm:$0xff] %vm571_vm1, %v568_v53  ;;  %584 = vst.msk [vmem:[%s1131_s7 + $0x60] sm:$0xff] %vm571_vm1, %v567_v54  ;;  %v476_v55 = vpop.xlane.xlu1 %475  ;;  %v474_v56 = vpop.xlane.xlu0 %473 }
 0x282   :  { %v528_v57 = vpop.xlane.xlu1 %527  ;;  %v526_v58 = vpop.xlane.xlu0 %525 }
 0x283   :  { %v547_v37 = vsel %vm531_vm0, %v476_v55, %v528_v57  ;;  %v546_v59 = vsel %vm531_vm0, %v474_v56, %v526_v58 }
 0x284   :  { %v570_v62 = vadd.f32 %v1010_v61, %v547_v37  ;;  %v569_v42 = vadd.f32 %v1010_v61, %v546_v59 }
 0x286   :  { %587 = vst.msk [vmem:[%s1131_s7 + $0x78] sm:$0xff] %vm571_vm1, %v570_v62  ;;  %586 = vst.msk [vmem:[%s1131_s7 + $0x70] sm:$0xff] %vm571_vm1, %v569_v42 }
 0x287   :  { %592 = vsyncpa [#allocation3], 1 }

</bundles_post_ra>
